<compile_context>
chip_gen: v7x
topology: tpu7x:2x2x1
jax: 0.10.0
libtpu: 0.0.40
codegen_flags: <defaults>
</compile_context>

<pallas_src>
import jax
import jax.numpy as jnp
from jax.experimental import pallas as pl
from jax.experimental.pallas import tpu as pltpu


def semantic_attention_kernel(q_ref, kf_ref, v_ref, bias_ref,
                              Wt_ref, Ut_ref, b_ref, w_row_ref,
                              attn_ref, wts_ref, en_ref):
    # q_ref:    (TB, Q)       kf_ref: (TB*S, K)      v_ref: (TB, S, V)
    # bias_ref: (TB, S)  additive mask bias (0 or -inf)
    # Wt_ref:   (Q, Bn)       Ut_ref: (K, Bn)
    # b_ref:    (1, Bn)       w_row_ref: (1, Bn)
    tb, S, V = v_ref.shape
    Bn = Wt_ref.shape[-1]

    # Query projection: (TB, Q) @ (Q, Bn) -> (TB, Bn), f32 MXU accumulation.
    Wh = jnp.dot(q_ref[...], Wt_ref[...], preferred_element_type=jnp.float32)

    # Key projection as ONE MXU matmul with a real M dimension. Keys were
    # flattened in the wrapper, so no in-kernel (TB,S,K)->(TB*S,K) relayout.
    Uv = jnp.dot(kf_ref[...], Ut_ref[...], preferred_element_type=jnp.float32)
    # Sublane split; free when tb*S is 8-aligned (guaranteed by the tile
    # chooser) and at the demo shapes (S = 8).
    Uv = Uv.reshape(tb, S, Bn)

    # h = tanh(W q + U k + b): EUP tanh, f32 math (v5e has no bf16 VPU/EUP).
    # NOTE: for Bn < 128 these intermediates are lane-padded to 128; a
    # Bn-on-sublane transposed layout would avoid that — here it is kept in the
    # natural layout and simply accounted for in the wrapper's VMEM budget.
    h = jnp.tanh(Wh[:, None, :] + Uv + b_ref[...])             # (TB, S, Bn)

    # Lane-dense energies: e[b, s] = sum_n h[b, s, n] * w[n]  -> (TB, S)
    e = jnp.sum(h * w_row_ref[...], axis=-1)
    # masks: adding -inf to a finite energy reproduces torch's in-place
    # energies[masks] = -inf (and flows into the returned energies).
    e = e + bias_ref[...]

    # Softmax over the sequence axis (torch dim=1), lane-dense (TB, S).
    m = jnp.max(e, axis=-1, keepdims=True)
    p = jnp.exp(e - m)
    denom = jnp.sum(p, axis=-1, keepdims=True)
    w = p / denom                         # exact: denom is only (TB, 1)

    # Weighted value reduction on the VPU/XLU (sublane reduce); avoids M=1
    # per-batch MXU matmuls and the (TB,1,V) sublane-1 intermediate.
    attn = jnp.sum(v_ref[...].astype(jnp.float32) * w[:, :, None], axis=1)

    attn_ref[...] = attn.astype(attn_ref.dtype)
    # Lane-dense (TB, S) output slabs (no size-1 trailing dim -> unmasked vst);
    # the wrapper reshapes back to [B, S, 1].
    wts_ref[...] = w.astype(wts_ref.dtype)
    en_ref[...] = e.astype(en_ref.dtype)


def _choose_tile(B, S, Q, K, V, Bn, in_itemsize, budget_bytes, small_vmem):
    """Largest batch tile that fits the VMEM budget, preferring divisors of B."""
    max_tb = max(1, min(B, 1024))

    def ok_layout(t):
        # Keep the second-to-last dim of every batch-tiled BlockSpec either a
        # multiple of 8 (sublane tile) or the full array extent.
        return (((t % 8) == 0) or (t == B)) and ((((t * S) % 8) == 0) or (t == B))

    def step_bytes(t):
        bs = t * S
        io = 2 * ((t * Q + bs * K + bs * V) * in_itemsize   # q / keys / values
                  + bs * 4                                   # mask bias (f32)
                  + (t * V + 2 * bs) * 4)                    # outputs
        # Uv + h are lane-padded to >=128 lanes when Bn < 128, plus e/p/w/attn.
        inter = 2 * bs * max(Bn, 128) * 4 + 4 * bs * 4
        return io + inter

    cand = [t for t in range(1, max_tb + 1) if ok_layout(t)] or [B]
    fit = [t for t in cand if step_bytes(t) <= budget_bytes] or [min(cand)]
    tb_free = max(fit)
    div_fit = [t for t in fit if B % t == 0]
    tb = max(div_fit) if div_fit else min(fit)
    # A ragged last block (Pallas clamps edge DMAs) beats shrinking the tile a
    # lot — and it is what lets us avoid jnp.pad of keys/values entirely.
    if tb_free >= 2 * tb:
        tb = tb_free
    # Small-VMEM chips (v7x: 64 MiB/TC, 2 TensorCores): keep >= 2 grid steps so
    # the "parallel" batch axis can be split across both cores.
    if small_vmem and B > 1 and tb >= B:
        half = -(-B // 2)
        if ok_layout(half):
            tb = half
    return max(1, min(tb, B))


def semantic_attention(query, keys, values, W_t, U_t, b, w_t, masks=None,
                       *, tb=None, compute_dtype=None):
    """Forward pass of SemanticAttention.

    Args:
      query:  [B, Q] f32        keys: [B, S, K] f32      values: [B, S, V] f32
      W_t:    [Q, Bn]  (W.weight transposed, for x @ W^T)
      U_t:    [K, Bn]
      b:      [Bn] or [1, Bn]
      w_t:    [Bn, 1]
      masks:  optional bool [B, S]; True positions get energy = -inf (torch parity).
      tb:     optional explicit batch tile; by default derived from the VMEM budget.
      compute_dtype: e.g. jnp.bfloat16 to stream q/keys/values/weights in bf16
        (f32 accumulation and f32 tanh/softmax math are kept).
    Returns:
      (attn_feats [B, V], weights [B, S, 1], energies [B, S, 1])  (all f32)
    """
    B, Q = query.shape
    _, S, K = keys.shape
    V = values.shape[-1]
    Bn = W_t.shape[-1]

    if compute_dtype is not None:
        query = query.astype(compute_dtype)
        keys = keys.astype(compute_dtype)
        values = values.astype(compute_dtype)
        W_t = W_t.astype(compute_dtype)
        U_t = U_t.astype(compute_dtype)
    in_itemsize = jnp.dtype(query.dtype).itemsize

    # --- per-generation VMEM budgeting (explicit vmem_limit_bytes) -----------
    # v5e/v6e: 128 MiB physical (scoped defaults of 16/32 MiB are far too low);
    # v7x: 64 MiB per TensorCore.
    try:
        vmem_cap = int(pltpu.get_tpu_info().vmem_capacity_bytes)
        cap_known = True
    except Exception:                       # interpret mode / older jax
        vmem_cap = 64 << 20                 # conservative (v7x-sized) fallback
        cap_known = False
    vmem_limit = int(0.85 * vmem_cap)       # headroom for compiler scratch

    param_bytes = 2 * (Q * Bn + K * Bn + 2 * Bn) * 4   # double-buffered params
    budget = max(int(0.6 * vmem_limit) - param_bytes, 1 << 20)

    if tb is None:
        tb = _choose_tile(B, S, Q, K, V, Bn, in_itemsize, budget,
                          small_vmem=cap_known and vmem_cap <= (64 << 20))
    tb = max(1, min(int(tb), B))
    n_steps = pl.cdiv(B, tb)    # last block may be ragged: no jnp.pad of keys/values

    # Free metadata reshape (contiguous): the kernel's key projection becomes a
    # single (tb*S, K) @ (K, Bn) MXU matmul, no in-kernel reshape of keys.
    keys_flat = keys.reshape(B * S, K)
    b_row = jnp.asarray(b, jnp.float32).reshape(1, Bn)
    w_row = jnp.asarray(w_t, jnp.float32).reshape(1, Bn)    # (Bn,1) -> lane-dense

    if masks is None:
        bias = jnp.zeros((B, S), jnp.float32)
    else:
        bias = jnp.where(jnp.asarray(masks).reshape(B, S),
                         -jnp.inf, 0.0).astype(jnp.float32)

    out_shapes = (
        jax.ShapeDtypeStruct((B, V), jnp.float32),   # attn_feats
        jax.ShapeDtypeStruct((B, S), jnp.float32),   # weights (lane-dense)
        jax.ShapeDtypeStruct((B, S), jnp.float32),   # energies (lane-dense)
    )

    grid_spec = pltpu.PrefetchScalarGridSpec(
        num_scalar_prefetch=0,
        grid=(n_steps,),
        in_specs=[
            pl.BlockSpec((tb, Q), lambda i: (i, 0)),
            pl.BlockSpec((tb * S, K), lambda i: (i, 0)),
            pl.BlockSpec((tb, S, V), lambda i: (i, 0, 0)),
            pl.BlockSpec((tb, S), lambda i: (i, 0)),
            # Parameters: constant index_map -> stay resident in VMEM across the
            # grid.  (pipeline_mode=pl.Buffered(1) would also drop their second
            # buffer on VMEM-tight v7x; left at default for portability.)
            pl.BlockSpec((Q, Bn), lambda i: (0, 0)),
            pl.BlockSpec((K, Bn), lambda i: (0, 0)),
            pl.BlockSpec((1, Bn), lambda i: (0, 0)),
            pl.BlockSpec((1, Bn), lambda i: (0, 0)),
        ],
        out_specs=[
            pl.BlockSpec((tb, V), lambda i: (i, 0)),
            pl.BlockSpec((tb, S), lambda i: (i, 0)),
            pl.BlockSpec((tb, S), lambda i: (i, 0)),
        ],
    )

    attn, wts, en = pl.pallas_call(
        semantic_attention_kernel,
        out_shape=out_shapes,
        grid_spec=grid_spec,
        compiler_params=pltpu.CompilerParams(
            dimension_semantics=("parallel",),
            vmem_limit_bytes=vmem_limit),
    )(query, keys_flat, values, bias, W_t, U_t, b_row, w_row)

    # Restore the torch output shapes ([B, S, 1]) for weights / energies.
    return attn, wts.reshape(B, S, 1), en.reshape(B, S, 1)


def semantic_attention_ref(query, keys, values, W_t, U_t, b, w_t, masks=None):
    # Pure-JAX reference mirroring the PyTorch forward.
    Wh = query @ W_t                                       # [B, Bn]
    Uv = keys @ U_t                                        # [B, S, Bn]
    h = jnp.tanh(Wh[:, None, :] + Uv + b.reshape(1, -1))   # [B, S, Bn]
    e = h @ w_t                                            # [B, S, 1]
    if masks is not None:
        e = jnp.where(masks[:, :, None], -jnp.inf, e)
    w = jax.nn.softmax(e, axis=1)                          # [B, S, 1]
    attn = jnp.sum(values * w, axis=1)                     # [B, V]
    return attn, w, e


if __name__ == "__main__":
    B, S = 2, 8
    Q, K, V = 32, 32, 32
    Bn = 16

    key = jax.random.PRNGKey(0)
    kq, kk, kv, kW, kU, kw = jax.random.split(key, 6)

    query = jax.random.normal(kq, (B, Q), dtype=jnp.float32)
    keys = jax.random.normal(kk, (B, S, K), dtype=jnp.float32)
    values = jax.random.normal(kv, (B, S, V), dtype=jnp.float32)

    # Deterministic "nn.Linear"-style parameters (stored transposed for x @ W^T).
    W_t = jax.random.normal(kW, (Q, Bn), dtype=jnp.float32) * (1.0 / jnp.sqrt(Q))
    U_t = jax.random.normal(kU, (K, Bn), dtype=jnp.float32) * (1.0 / jnp.sqrt(K))
    b = jnp.ones((Bn,), dtype=jnp.float32)   # nn.Parameter(torch.ones(bottleneck))
    w_t = jax.random.normal(kw, (Bn, 1), dtype=jnp.float32) * (1.0 / jnp.sqrt(Bn))

    # 1) f32 path (exact softmax normalization -> tight tolerances).
    attn, wts, en = semantic_attention(query, keys, values, W_t, U_t, b, w_t)
    jax.block_until_ready((attn, wts, en))
    attn_r, wts_r, en_r = semantic_attention_ref(query, keys, values, W_t, U_t, b, w_t)
    assert jnp.allclose(en, en_r, atol=1e-5, rtol=1e-5)
    assert jnp.allclose(wts, wts_r, atol=1e-4, rtol=1e-4)
    assert jnp.allclose(attn, attn_r, atol=1e-4, rtol=1e-4)

    # 2) masked path (torch: energies[masks] = -inf before the softmax).
    masks = jnp.zeros((B, S), dtype=bool).at[0, 5:].set(True)
    attn_m, wts_m, en_m = semantic_attention(query, keys, values, W_t, U_t, b, w_t, masks)
    jax.block_until_ready((attn_m, wts_m, en_m))
    attn_mr, wts_mr, en_mr = semantic_attention_ref(query, keys, values, W_t, U_t, b,
                                                    w_t, masks)
    assert jnp.allclose(en_m, en_mr, atol=1e-5, rtol=1e-5)
    assert jnp.allclose(wts_m, wts_mr, atol=1e-4, rtol=1e-4)
    assert jnp.allclose(attn_m, attn_mr, atol=1e-4, rtol=1e-4)

    # 3) bf16-stream path (halves HBM traffic; accumulation / math stays f32).
    attn_b, wts_b, en_b = semantic_attention(query, keys, values, W_t, U_t, b, w_t,
                                             compute_dtype=jnp.bfloat16)
    jax.block_until_ready((attn_b, wts_b, en_b))
    assert jnp.allclose(en_b, en_r, atol=1e-1, rtol=1e-1)
    assert jnp.allclose(attn_b, attn_r, atol=1e-1, rtol=1e-1)

    print("KERNEL_OK")
</pallas_src>

<mosaic_0001>
module attributes {stable_mosaic.version = 11 : i64} {
  func.func @semantic_attention_kernel(%arg0: i32, %arg1: memref<2x32xf32, #tpu.memory_space<vmem>>, %arg2: memref<16x32xf32, #tpu.memory_space<vmem>>, %arg3: memref<2x8x32xf32, #tpu.memory_space<vmem>>, %arg4: memref<2x8xf32, #tpu.memory_space<vmem>>, %arg5: memref<32x16xf32, #tpu.memory_space<vmem>>, %arg6: memref<32x16xf32, #tpu.memory_space<vmem>>, %arg7: memref<1x16xf32, #tpu.memory_space<vmem>>, %arg8: memref<1x16xf32, #tpu.memory_space<vmem>>, %arg9: memref<2x32xf32, #tpu.memory_space<vmem>>, %arg10: memref<2x8xf32, #tpu.memory_space<vmem>>, %arg11: memref<2x8xf32, #tpu.memory_space<vmem>>) attributes {dimension_semantics = [#tpu.dimension_semantics<parallel>], iteration_bounds = array<i64: 1>, scalar_prefetch = 0 : i64, scratch_operands = 0 : i64, tpu.core_type = #tpu.core_type<tc>, window_params = [{transform_indices = @transform_0, window_bounds = array<i64: 2, 32>}, {transform_indices = @transform_1, window_bounds = array<i64: 16, 32>}, {transform_indices = @transform_2, window_bounds = array<i64: 2, 8, 32>}, {transform_indices = @transform_3, window_bounds = array<i64: 2, 8>}, {pipeline_mode = #tpu.pipeline_mode<synchronous>, transform_indices = @transform_4, window_bounds = array<i64: 32, 16>}, {pipeline_mode = #tpu.pipeline_mode<synchronous>, transform_indices = @transform_5, window_bounds = array<i64: 32, 16>}, {pipeline_mode = #tpu.pipeline_mode<synchronous>, transform_indices = @transform_6, window_bounds = array<i64: 1, 16>}, {pipeline_mode = #tpu.pipeline_mode<synchronous>, transform_indices = @transform_7, window_bounds = array<i64: 1, 16>}, {transform_indices = @transform_8, window_bounds = array<i64: 2, 32>}, {transform_indices = @transform_9, window_bounds = array<i64: 2, 8>}, {transform_indices = @transform_10, window_bounds = array<i64: 2, 8>}]} {
    %c0 = arith.constant 0 : index
    %c0_0 = arith.constant 0 : index
    %0 = vector.load %arg1[%c0, %c0_0] : memref<2x32xf32, #tpu.memory_space<vmem>>, vector<2x32xf32>
    %c0_1 = arith.constant 0 : index
    %c0_2 = arith.constant 0 : index
    %1 = vector.load %arg5[%c0_1, %c0_2] : memref<32x16xf32, #tpu.memory_space<vmem>>, vector<32x16xf32>
    %cst = arith.constant dense<0.000000e+00> : vector<2x16xf32>
    %2 = tpu.matmul %0, %1, %cst {dimension_numbers = #tpu.dot_dimension_numbers<[1], [0], [0], [1], [0, 0, 1, 1], [], []>} : vector<2x32xf32>, vector<32x16xf32>, vector<2x16xf32> -> vector<2x16xf32>
    %c0_3 = arith.constant 0 : index
    %c0_4 = arith.constant 0 : index
    %3 = vector.load %arg2[%c0_3, %c0_4] : memref<16x32xf32, #tpu.memory_space<vmem>>, vector<16x32xf32>
    %c0_5 = arith.constant 0 : index
    %c0_6 = arith.constant 0 : index
    %4 = vector.load %arg6[%c0_5, %c0_6] : memref<32x16xf32, #tpu.memory_space<vmem>>, vector<32x16xf32>
    %cst_7 = arith.constant dense<0.000000e+00> : vector<16x16xf32>
    %5 = tpu.matmul %3, %4, %cst_7 {dimension_numbers = #tpu.dot_dimension_numbers<[1], [0], [0], [1], [0, 0, 1, 1], [], []>} : vector<16x32xf32>, vector<32x16xf32>, vector<16x16xf32> -> vector<16x16xf32>
    %6 = vector.shape_cast %5 : vector<16x16xf32> to vector<2x8x16xf32>
    %7 = vector.shape_cast %2 : vector<2x16xf32> to vector<2x1x16xf32>
    %8 = vector.broadcast %7 : vector<2x1x16xf32> to vector<2x8x16xf32>
    %9 = arith.addf %8, %6 : vector<2x8x16xf32>
    %c0_8 = arith.constant 0 : index
    %c0_9 = arith.constant 0 : index
    %10 = vector.load %arg7[%c0_8, %c0_9] : memref<1x16xf32, #tpu.memory_space<vmem>>, vector<1x16xf32>
    %11 = vector.shape_cast %10 : vector<1x16xf32> to vector<1x1x16xf32>
    %12 = vector.broadcast %11 : vector<1x1x16xf32> to vector<2x8x16xf32>
    %13 = arith.addf %9, %12 : vector<2x8x16xf32>
    %14 = math.tanh %13 : vector<2x8x16xf32>
    %c0_10 = arith.constant 0 : index
    %c0_11 = arith.constant 0 : index
    %15 = vector.load %arg8[%c0_10, %c0_11] : memref<1x16xf32, #tpu.memory_space<vmem>>, vector<1x16xf32>
    %16 = vector.shape_cast %15 : vector<1x16xf32> to vector<1x1x16xf32>
    %17 = vector.broadcast %16 : vector<1x1x16xf32> to vector<2x8x16xf32>
    %18 = arith.mulf %14, %17 : vector<2x8x16xf32>
    %cst_12 = arith.constant dense<0.000000e+00> : vector<2x8xf32>
    %19 = vector.multi_reduction <add>, %18, %cst_12 [2] : vector<2x8x16xf32> to vector<2x8xf32>
    %c0_13 = arith.constant 0 : index
    %c0_14 = arith.constant 0 : index
    %20 = vector.load %arg4[%c0_13, %c0_14] : memref<2x8xf32, #tpu.memory_space<vmem>>, vector<2x8xf32>
    %21 = arith.addf %19, %20 : vector<2x8xf32>
    %cst_15 = arith.constant dense<0xFF800000> : vector<2xf32>
    %22 = vector.multi_reduction <maximumf>, %21, %cst_15 [1] : vector<2x8xf32> to vector<2xf32>
    %23 = vector.shape_cast %22 : vector<2xf32> to vector<2x1xf32>
    %24 = vector.broadcast %23 : vector<2x1xf32> to vector<2x8xf32>
    %25 = arith.subf %21, %24 : vector<2x8xf32>
    %26 = math.exp %25 : vector<2x8xf32>
    %cst_16 = arith.constant dense<0.000000e+00> : vector<2xf32>
    %27 = vector.multi_reduction <add>, %26, %cst_16 [1] : vector<2x8xf32> to vector<2xf32>
    %28 = vector.shape_cast %27 : vector<2xf32> to vector<2x1xf32>
    %29 = vector.broadcast %28 : vector<2x1xf32> to vector<2x8xf32>
    %30 = arith.divf %26, %29 : vector<2x8xf32>
    %c0_17 = arith.constant 0 : index
    %c0_18 = arith.constant 0 : index
    %c0_19 = arith.constant 0 : index
    %31 = vector.load %arg3[%c0_17, %c0_18, %c0_19] : memref<2x8x32xf32, #tpu.memory_space<vmem>>, vector<2x8x32xf32>
    %32 = vector.shape_cast %30 : vector<2x8xf32> to vector<2x8x1xf32>
    %33 = vector.broadcast %32 : vector<2x8x1xf32> to vector<2x8x32xf32>
    %34 = arith.mulf %31, %33 : vector<2x8x32xf32>
    %cst_20 = arith.constant dense<0.000000e+00> : vector<2x32xf32>
    %35 = vector.multi_reduction <add>, %34, %cst_20 [1] : vector<2x8x32xf32> to vector<2x32xf32>
    %c0_21 = arith.constant 0 : index
    %c0_22 = arith.constant 0 : index
    %36 = vector.load %arg9[%c0_21, %c0_22] : memref<2x32xf32, #tpu.memory_space<vmem>>, vector<2x32xf32>
    tpu.vector_store %arg9[%c0_21, %c0_22], %35 {strides = array<i32>} : memref<2x32xf32, #tpu.memory_space<vmem>>, vector<2x32xf32>,
    %c0_23 = arith.constant 0 : index
    %c0_24 = arith.constant 0 : index
    %37 = vector.load %arg10[%c0_23, %c0_24] : memref<2x8xf32, #tpu.memory_space<vmem>>, vector<2x8xf32>
    tpu.vector_store %arg10[%c0_23, %c0_24], %30 {strides = array<i32>} : memref<2x8xf32, #tpu.memory_space<vmem>>, vector<2x8xf32>,
    %c0_25 = arith.constant 0 : index
    %c0_26 = arith.constant 0 : index
    %38 = vector.load %arg11[%c0_25, %c0_26] : memref<2x8xf32, #tpu.memory_space<vmem>>, vector<2x8xf32>
    tpu.vector_store %arg11[%c0_25, %c0_26], %21 {strides = array<i32>} : memref<2x8xf32, #tpu.memory_space<vmem>>, vector<2x8xf32>,
    return
  }
  func.func @transform_0(%arg0: i32) -> (i32, i32) {
    %c0_i32 = arith.constant 0 : i32
    %c0_i32_0 = arith.constant 0 : i32
    return %arg0, %c0_i32 : i32, i32
  }
  func.func @transform_1(%arg0: i32) -> (i32, i32) {
    %c0_i32 = arith.constant 0 : i32
    %c0_i32_0 = arith.constant 0 : i32
    return %arg0, %c0_i32 : i32, i32
  }
  func.func @transform_2(%arg0: i32) -> (i32, i32, i32) {
    %c0_i32 = arith.constant 0 : i32
    %c0_i32_0 = arith.constant 0 : i32
    %c0_i32_1 = arith.constant 0 : i32
    return %arg0, %c0_i32, %c0_i32_0 : i32, i32, i32
  }
  func.func @transform_3(%arg0: i32) -> (i32, i32) {
    %c0_i32 = arith.constant 0 : i32
    %c0_i32_0 = arith.constant 0 : i32
    return %arg0, %c0_i32 : i32, i32
  }
  func.func @transform_4(%arg0: i32) -> (i32, i32) {
    %c0_i32 = arith.constant 0 : i32
    %c0_i32_0 = arith.constant 0 : i32
    %c0_i32_1 = arith.constant 0 : i32
    return %c0_i32, %c0_i32_0 : i32, i32
  }
  func.func @transform_5(%arg0: i32) -> (i32, i32) {
    %c0_i32 = arith.constant 0 : i32
    %c0_i32_0 = arith.constant 0 : i32
    %c0_i32_1 = arith.constant 0 : i32
    return %c0_i32, %c0_i32_0 : i32, i32
  }
  func.func @transform_6(%arg0: i32) -> (i32, i32) {
    %c0_i32 = arith.constant 0 : i32
    %c0_i32_0 = arith.constant 0 : i32
    %c0_i32_1 = arith.constant 0 : i32
    return %c0_i32, %c0_i32_0 : i32, i32
  }
  func.func @transform_7(%arg0: i32) -> (i32, i32) {
    %c0_i32 = arith.constant 0 : i32
    %c0_i32_0 = arith.constant 0 : i32
    %c0_i32_1 = arith.constant 0 : i32
    return %c0_i32, %c0_i32_0 : i32, i32
  }
  func.func @transform_8(%arg0: i32) -> (i32, i32) {
    %c0_i32 = arith.constant 0 : i32
    %c0_i32_0 = arith.constant 0 : i32
    return %arg0, %c0_i32 : i32, i32
  }
  func.func @transform_9(%arg0: i32) -> (i32, i32) {
    %c0_i32 = arith.constant 0 : i32
    %c0_i32_0 = arith.constant 0 : i32
    return %arg0, %c0_i32 : i32, i32
  }
  func.func @transform_10(%arg0: i32) -> (i32, i32) {
    %c0_i32 = arith.constant 0 : i32
    %c0_i32_0 = arith.constant 0 : i32
    return %arg0, %c0_i32 : i32, i32
  }
}

</mosaic_0001>

<bundles_post_ra>
// kernel: tpu_custom_call.1
= control target key start
LH: loop header
LB: loop body
LE: loop exit
PB: predicated region body
PF: predicated region fallthrough
CT: control target
= control target key end

     0   :  { %16 = vsyncpa [#allocation3], 0  ;;  %v591_v3 = vmov 0.0|0.0   ;;  %vm592_vm0 = vmmov 0   ;;  %v593_v8 = vmov 0.0   ;;  %s770_s0 = inlined_call_operand.vmem [shape: f32[2,32], index: 0, kind: input, shape index: {}]   ;;  %s771_s1 = inlined_call_operand.vmem [shape: f32[16,32], index: 1, kind: input, shape index: {}]   ;;  %s772_s2 = inlined_call_operand.vmem [shape: f32[2,8,32], index: 2, kind: input, shape index: {}]   ;;  %s773_s3 = inlined_call_operand.vmem [shape: f32[2,8], index: 3, kind: input, shape index: {}]   ;;  %s774_s4 = inlined_call_operand.vmem [shape: f32[32,16], index: 4, kind: input, shape index: {}]   ;;  %s775_s5 = inlined_call_operand.vmem [shape: f32[32,16], index: 5, kind: input, shape index: {}]   ;;  %s776_s6 = inlined_call_operand.vmem [shape: f32[1,16], index: 6, kind: input, shape index: {}]   ;;  %s777_s7 = inlined_call_operand.vmem [shape: f32[1,16], index: 7, kind: input, shape index: {}]   ;;  %s778_s8 = inlined_call_operand.hbm [shape: f32[2,32], index: 8, kind: output, shape index: {0}]   ;;  %s779_s9 = inlined_call_operand.hbm [shape: f32[2,8], index: 9, kind: output, shape index: {1}]   ;;  %s780_s10 = inlined_call_operand.hbm [shape: f32[2,8], index: 10, kind: output, shape index: {2}]  }
   0x1   :  { %v35_v0 = vld [vmem:[%s774_s4] sm:$0xff]  ;;  %v36_v1 = vld [vmem:[%s774_s4 + $0x8] sm:$0xff]  ;;  %485 = vmatprep.subr.bf16.mxu0 %v591_v3  ;;  %v37_v6 = vld [vmem:[%s774_s4 + $0x10] sm:$0xff]  ;;  %471 = vmatprep.mubr.msk.f32.mxu0 %vm592_vm0, %v593_v8 }
   0x2   :  { %v115_v2 = vld [vmem:[%s775_s5] sm:$0xff]  ;;  %v486_v4 = vpack.c.bf16 %v36_v1, %v35_v0  ;;  %v116_v5 = vld [vmem:[%s775_s5 + $0x8] sm:$0xff]  ;;  %v38_v7 = vld [vmem:[%s774_s4 + $0x18] sm:$0xff] }
   0x3   :  { %v491_v9 = vpack.c.bf16 %v116_v5, %v115_v2  ;;  %v117_v10 = vld [vmem:[%s775_s5 + $0x10] sm:$0xff]  ;;  %v118_v11 = vld [vmem:[%s775_s5 + $0x18] sm:$0xff]  ;;  %v489_v12 = vpack.c.bf16 %v38_v7, %v37_v6  ;;  %v113_v14 = vld [vmem:[%s771_s1] sm:$0xff] }
   0x4   :  { %487 = vmatpush3.bf16.msra.mxu0 %v486_v4  ;;  %v495_v13 = vpack.c.bf16 %v118_v11, %v117_v10 }
   0x5   :  { %17 = vsyncpa [#allocation5], 0  ;;  %488 = vmatprep.subr.bf16.mxu0 %v591_v3  ;;  %492 = vmatprep.subr.bf16.mxu1 %v491_v9  ;;  %vm39_vm1 = vcmask 261120   ;;  %v34_v15 = vld [vmem:[%s770_s0] sm:$0x3]  ;;  %v114_v16 = vld [vmem:[%s771_s1 + $0x8] sm:$0xff]  ;;  %v204_v17 = vlaneseq }
   0x6   :  { %494 = vmatpush3.bf16.msra.mxu1 %v491_v9  ;;  %482 = vmatprep.mubr.msk.f32.mxu1 %vm39_vm1, %v113_v14  ;;  %v262_v20 = vld [vmem:[%s773_s3] sm:$0x3]  ;;  %v594_v24 = vmov 1966171168   ;;  %vm255_vm2 = vcmask 130048   ;;  %v595_v50 = vmov 0  }
   0x7   :  { %496 = vmatprep.subr.bf16.mxu1 %v495_v13  ;;  %v205_v18 = vshrl.u32 %v204_v17, 7  ;;  %v202_v25 = vunpack.c.l.s4 %v594_v24  ;;  %v450_v37 = vld [vmem:[%s776_s6] ss:$0 sm:$0xff]  ;;  %507 = vset.pattern.permute.xlu0 %v595_v50  ;;  %v291_v57 = vand.u32 127, %v204_v17  ;;  %vm300_vm3 = vcmask 1041409   ;;  %s596_s18 = smov [#allocation4]  }
   0x8   :  { %490 = vmatpush3.bf16.msra.mxu0 %v489_v12  ;;  %v451_v43 = vld [vmem:[%s777_s7] ss:$0 sm:$0xff]  ;;  %508 = vset.pattern.permute.xlu1 %v595_v50  ;;  %vm303_vm4 = vcmask 58368   ;;  %s422_s19 = sshll.u32 %s596_s18, 4  ;;  %s597_s20 = smov [#allocation6]   ;;  %s423_s19 = int_to_ptr.vmem [resolvable:$true] %s422_s19 }
   0x9   :  { %v690_v19 = vsub.s32 0, %v205_v18  ;;  %v695_v21 = vsub.s32 1, %v205_v18  ;;  %v203_v26 = vunpack.c.0.s8 %v202_v25  ;;  %v294_v58 = vsub.s32 %v291_v57, %v205_v18  ;;  %v360_v25 = vld [vmem:[%s772_s2] sm:$0xff]  ;;  %s432_s21 = sshll.u32 %s597_s20, 4  ;;  %p526_p1 = scmp.lt.s32.totalorder %s423_s19, %s423_s19  ;;  %s725_s21 = int_to_ptr.vmem [resolvable:$true] %s432_s21 }
   0xa   :  { %498 = vmatpush3.bf16.msra.mxu1 %v495_v13 }
   0xb   :  { %472 = vmatmul.mubr.msk.f32.vlgmr.msra.gmra.mrb[0].mxu0 %vm39_vm1, %v34_v15  ;;  %v267_v22 = vrot.slane %v262_v20, %v690_v19  ;;  %v274_v23 = vrot.slane %v262_v20, %v695_v21  ;;  %v206_v27 = vsub.s32 %v203_v26, %v205_v18 }
   0xd   :  { %483 = vmatmul.mubr.msk.f32.vlgmr.msra.gmra.mrb[0].mxu1 %vm39_vm1, %v114_v16  ;;  %269 = vbcast.lane.b32.xlu1 %v267_v22, 256 }
  0x11   :  { %276 = vbcast.lane.b32.xlu1 %v274_v23, 256 }
  0x7f   :  { %v270_v51 = vpop.permute.xlu1 %269 }
  0x83   :  { %v277_v54 = vpop.permute.xlu1 %276 }
  0xde   :  { %v109_v28 = vpop.f32.mrb[0].mxu0 }
  0xdf   :  { %v207_v29 = vrot.slane %v109_v28, %v206_v27  ;;  %v473_v30 = vpop.f32.mrb[1].mxu0 }
  0xe0   :  { %v484_v31 = vpop.f32.mrb[0].mxu1 }
  0xe1   :  { %v208_v32 = vcombine.high %v207_v29, %v207_v29  ;;  %v215_v33 = vrot.slane %v207_v29, %v206_v27  ;;  %v191_v34 = vpop.f32.mrb[1].mxu1 }
  0xe3   :  { %v222_v35 = vrot.slane %v208_v32, %v206_v27  ;;  %v226_v36 = vrot.slane %v215_v33, %v690_v19 }
  0xe5   :  { %v230_v38 = vrot.slane %v222_v35, %v690_v19  ;;  %v233_v39 = vadd.f32 %v226_v36, %v191_v34 }
  0xe7   :  { %v234_v40 = vadd.f32 %v484_v31, %v230_v38  ;;  %v242_v41 = vadd.f32 %v450_v37, %v233_v39 }
  0xe9   :  { %v243_v42 = vadd.f32 %v450_v37, %v234_v40  ;;  %509 = vtanh.f32 %v242_v41 }
  0xeb   :  { %511 = vtanh.f32 %v243_v42 }
  0xf3   :  { %v510_v44 = vpop.eup %509 }
  0xf4   :  { %v253_v45 = vmul.f32 %v510_v44, %v451_v43 }
  0xf5   :  { %v512_v46 = vpop.eup %511 }
  0xf6   :  { %v256_v47 = vsel %vm255_vm2, %v253_v45, 0.0  ;;  %v254_v48 = vmul.f32 %v512_v46, %v451_v43 }
  0xf7   :  { %257 = vadd.xlane.f32.xlu0 %v256_v47 }
  0xf8   :  { %v259_v49 = vsel %vm255_vm2, %v254_v48, 0.0 }
  0xfb   :  { %260 = vadd.xlane.f32.xlu0 %v259_v49 }
 0x184   :  { %v258_v52 = vpop.xlane.xlu0 %257 }
 0x185   :  { %v280_v53 = vadd.f32 %v270_v51, %v258_v52 }
 0x187   :  { %285 = vperm.xlu0 %507, %v280_v53  }
 0x188   :  { %v261_v55 = vpop.xlane.xlu0 %260 }
 0x189   :  { %v281_v56 = vadd.f32 %v277_v54, %v261_v55 }
 0x18b   :  { %288 = vperm.xlu1 %508, %v281_v56  }
 0x206   :  { %v286_v59 = vpop.permute.xlu0 %285 }
 0x207   :  { %v295_v61 = vrot.slane %v286_v59, %v294_v58 }
 0x20a   :  { %v289_v60 = vpop.permute.xlu1 %288 }
 0x20b   :  { %v299_v62 = vrot.slane %v289_v60, %v294_v58 }
 0x20d   :  { %v301_v63 = vsel %vm300_vm3, %v299_v62, %v295_v61 }
 0x20e   :  { %v304_v0 = vsel %vm303_vm4, %v301_v63, -inf  ;;  %405 = vst.msk [vmem:[#allocation6] sm:$0x3] %vm303_vm4, %v301_v63 }
 0x20f   :  { %305 = vmax.xlane.f32.xlu1 %v304_v0 }
 0x29c   :  { %v306_v1 = vpop.xlane.xlu1 %305 }
 0x29d   :  { %v311_v2 = vrot.slane %v306_v1, %v690_v19  ;;  %v315_v3 = vrot.slane %v306_v1, %v695_v21 }
 0x29f   :  { %v318_v4 = vsub.f32 %v280_v53, %v311_v2  ;;  %v319_v5 = vsub.f32 %v281_v56, %v315_v3 }
 0x2a1   :  { %v320_v6 = vmul.f32 1.442695, %v318_v4  ;;  %v322_v7 = vmul.f32 1.442695, %v319_v5 }
 0x2a3   :  { %513 = vpow2.f32 %v320_v6 }
 0x2a4   :  { %515 = vpow2.f32 %v322_v7 }
 0x2ad   :  { %v514_v8 = vpop.eup %513 }
 0x2ae   :  { %v516_v9 = vpop.eup %515  ;;  %327 = vperm.xlu1 %508, %v514_v8  }
 0x2af   :  { %330 = vperm.xlu0 %507, %v516_v9  }
 0x32d   :  { %v328_v10 = vpop.permute.xlu1 %327 }
 0x32e   :  { %v331_v11 = vpop.permute.xlu0 %330  ;;  %v335_v12 = vrot.slane %v328_v10, %v294_v58 }
 0x32f   :  { %v339_v13 = vrot.slane %v331_v11, %v294_v58 }
 0x331   :  { %v340_v14 = vsel %vm300_vm3, %v339_v13, %v335_v12 }
 0x332   :  { %v342_v15 = vsel %vm303_vm4, %v340_v14, 0.0 }
 0x333   :  { %343 = vadd.xlane.f32.xlu0 %v342_v15 }
 0x3c0   :  { %v344_v16 = vpop.xlane.xlu0 %343 }
 0x3c1   :  { %v349_v17 = vrot.slane %v344_v16, %v690_v19  ;;  %v353_v18 = vrot.slane %v344_v16, %v695_v21  ;;  %v361_v19 = vld [vmem:[%s772_s2 + $0x8] sm:$0xff]  ;;  %s521_s2 = scalar_lea.vmem %s423_s19, 32 }
 0x3c2   :  { %p522_p0 = scmp.ne.s32.totalorder %s423_s19, %s521_s2  ;;  %p527_p2 = scmp.lt.s32.totalorder %s521_s2, %s521_s2 }
 0x3c3   :  { %517 = vrcp.f32 %v349_v17 }
 0x3c4   :  { %519 = vrcp.f32 %v353_v18  ;;  %p528_p3 = por %p527_p2, %p526_p1 }
 0x3c6   :  { %p529_p4 = pnand %p528_p3, %p522_p0 }
 0x3cd   :  { %v518_v20 = vpop.eup %517 }
 0x3ce   :  { %v357_v22 = vmul.f32 %v518_v20, %v514_v8  ;;  %v520_v23 = vpop.eup %519 }
 0x3cf   :  { %v359_v24 = vmul.f32 %v520_v23, %v516_v9 }
 0x3d0   :  { %364 = vperm.xlu1 %508, %v357_v22  }
 0x3d4   :  { %369 = vperm.xlu1 %508, %v359_v24  }
 0x44f   :  { %v365_v26 = vpop.permute.xlu1 %364 }
 0x450   :  { %v372_v27 = vmul.f32 %v365_v26, %v360_v25  ;;  %v397_v30 = vrot.slane %v365_v26, %v294_v58 }
 0x452   :  { %v374_v21 = vsel %vm39_vm1, %v372_v27, 0.0 }
 0x453   :  { %v375_v28 = vrot.slane %v374_v21, 4  ;;  %v370_v29 = vpop.permute.xlu1 %369 }
 0x454   :  { %v373_v31 = vmul.f32 %v370_v29, %v361_v19  ;;  %v401_v32 = vrot.slane %v370_v29, %v294_v58 }
 0x455   :  { %v376_v33 = vadd.f32 %v375_v28, %v374_v21 }
 0x456   :  { %v381_v34 = vsel %vm39_vm1, %v373_v31, 0.0  ;;  %v402_v35 = vsel %vm300_vm3, %v401_v32, %v397_v30 }
 0x457   :  { %v377_v36 = vrot.slane %v376_v33, 2  ;;  %v382_v37 = vrot.slane %v381_v34, 4  ;;  %404 = vst.msk [vmem:[#allocation4] sm:$0x3] %vm303_vm4, %v402_v35 }
 0x458   :  { %532 = shalt.err (!%p529_p4)
}
 0x459   :  { %s533_s24 = scalar_lea.hbm %s779_s9, 32 }
 0x45a   :  { %p534_p5 = scmp.ne.s32.totalorder %s779_s9, %s533_s24  ;;  %p537_p6 = scmp.lt.u32.totalorder %s533_s24, %s779_s9 }
 0x45c   :  { %p539_p7 = pnand %p537_p6, %p534_p5 }
 0x45e   :  { %542 = shalt.err (!%p539_p7)
}
 0x45f   :  { %425 = dma.vmem_to_hbm [thread:$0]  %s423_s19, 32, %s779_s9, [#allocation5]   ;;  %v378_v38 = vadd.f32 %v377_v36, %v376_v33  ;;  %v383_v39 = vadd.f32 %v382_v37, %v381_v34 }
 0x460   :  { %s543_s4 = scalar_lea.vmem %s725_s21, 32  ;;  %p548_p9 = scmp.lt.s32.totalorder %s725_s21, %s725_s21 }
 0x461   :  { %p544_p8 = scmp.ne.s32.totalorder %s725_s21, %s543_s4  ;;  %p549_p10 = scmp.lt.s32.totalorder %s543_s4, %s543_s4 }
 0x463   :  { %p550_p11 = por %p549_p10, %p548_p9 }
 0x465   :  { %p551_p12 = pnand %p550_p11, %p544_p8 }
 0x467   :  { %554 = shalt.err (!%p551_p12)
}
 0x468   :  { %s555_s12 = scalar_lea.hbm %s780_s10, 32 }
 0x469   :  { %p556_p13 = scmp.ne.s32.totalorder %s780_s10, %s555_s12  ;;  %p559_p0 = scmp.lt.u32.totalorder %s555_s12, %s780_s10 }
 0x46b   :  { %p561_p1 = pnand %p559_p0, %p556_p13 }
 0x46d   :  { %564 = shalt.err (!%p561_p1)
}
 0x46e   :  { %435 = dma.vmem_to_hbm [thread:$0]  %s725_s21, 32, %s780_s10, [#allocation5]   ;;  %v384_v40 = vrot.slane %v383_v39, 2  ;;  %v379_v42 = vrot.slane %v378_v38, 1  ;;  %vm392_vm5 = vcmask 254976  }
 0x46f   :  { %s598_s15 = smov [#allocation2]  }
 0x470   :  { %v385_v41 = vadd.f32 %v384_v40, %v383_v39  ;;  %s412_s6 = sshll.u32 %s598_s15, 4  ;;  %v380_v44 = vadd.f32 %v379_v42, %v378_v38  ;;  %s413_s6 = int_to_ptr.vmem [resolvable:$true] %s412_s6 }
 0x471   :  { %s565_s7 = scalar_lea.vmem %s413_s6, 32  ;;  %p570_p3 = scmp.lt.s32.totalorder %s413_s6, %s413_s6 }
 0x472   :  { %v386_v43 = vrot.slane %v385_v41, 1  ;;  %p566_p2 = scmp.ne.s32.totalorder %s413_s6, %s565_s7  ;;  %p571_p4 = scmp.lt.s32.totalorder %s565_s7, %s565_s7 }
 0x474   :  { %v387_v45 = vadd.f32 %v386_v43, %v385_v41  ;;  %p572_p5 = por %p571_p4, %p570_p3 }
 0x476   :  { %v390_v46 = vsel %vm300_vm3, %v387_v45, %v380_v44  ;;  %p573_p6 = pnand %p572_p5, %p566_p2 }
 0x477   :  { %393 = vst.msk [vmem:[#allocation2] sm:$0x3] %vm392_vm5, %v390_v46 }
 0x478   :  { %576 = shalt.err (!%p573_p6)
}
 0x479   :  { %s577_s17 = scalar_lea.hbm %s778_s8, 32 }
 0x47a   :  { %p578_p7 = scmp.ne.s32.totalorder %s778_s8, %s577_s17  ;;  %p581_p8 = scmp.lt.u32.totalorder %s577_s17, %s778_s8 }
 0x47c   :  { %p583_p9 = pnand %p581_p8, %p578_p7 }
 0x47e   :  { %586 = shalt.err (!%p583_p9)
}
 0x47f   :  { %415 = dma.vmem_to_hbm [thread:$0]  %s413_s6, 32, %s778_s8, [#allocation3]  }
 0x480   :  { %587 = dma.done.wait [#allocation3], 32  }
 0x481   :  { %588 = vsyncadd [#allocation3], 4294967264 }
 0x482   :  { %589 = dma.done.wait [#allocation5], 64  }
 0x483   :  { %590 = vsyncadd [#allocation5], 4294967232 }
 0x484   :  { %445 = vsyncpa [#allocation3], 1 }
 0x485   :  { %446 = vsyncpa [#allocation5], 1 }

</bundles_post_ra>
